<compile_context>
chip_gen: v6e
topology: v6e:2x2x1
jax: 0.10.0
libtpu: 0.0.40
codegen_flags: <defaults>
</compile_context>

<pallas_src>
import math
import functools

import jax
import jax.numpy as jnp
from jax.experimental import pallas as pl
from jax.experimental.pallas import tpu as pltpu


# ---------------------------------------------------------------------------
# Kernel 1: K/V input projections (prologue, one (batch, seq-tile) per step)
# ---------------------------------------------------------------------------
def kv_proj_kernel(k_ref, v_ref, wk_ref, bk_ref, wv_ref, bv_ref, kp_ref, vp_ref):
    """K = k @ Wk^T + bk, V = v @ Wv^T + bv, emitted as bf16.

    k_ref, v_ref : (TS, D) bf16   kp_ref, vp_ref : (TS, D) bf16
    wk/wv_ref    : (D, D)  bf16   bk/bv_ref      : (1, D)  f32
    """
    kp_ref[...] = (jnp.dot(k_ref[...], wk_ref[...],
                           preferred_element_type=jnp.float32)
                   + bk_ref[...]).astype(kp_ref.dtype)
    vp_ref[...] = (jnp.dot(v_ref[...], wv_ref[...],
                           preferred_element_type=jnp.float32)
                   + bv_ref[...]).astype(vp_ref.dtype)


# ---------------------------------------------------------------------------
# Kernel 2: flash-style attention + fused output projection + residual + LN
# ---------------------------------------------------------------------------
def mha_attn_kernel(q_ref, k_ref, v_ref,
                    wq_ref, bq_ref, wo_ref, bo_ref, gamma_ref, beta_ref,
                    o_ref,
                    qp_scr, m_scr, l_scr, acc_scr,
                    *, num_heads: int, d_k: int, eps: float, approx_recip: bool):
    """One (batch, q_tile, kv_tile) grid step.

    q_ref            : (TQ, D)  f32   query rows (also the residual)
    k_ref, v_ref     : (TKV, D) bf16  projected keys / values for this kv tile
    wq_ref / wo_ref  : (D, D)   bf16  (wq pre-scaled by 1/sqrt(d_k))
    bq/bo/gamma/beta : (1, D)   f32
    o_ref            : (TQ, D)  f32
    qp_scr           : (TQ, D)  bf16  VMEM scratch: projected Q for this q-tile
    m_scr, l_scr     : (H, TQ, 1) f32 VMEM scratch: online-softmax running max/sum
    acc_scr          : (H, TQ, d_k) f32 VMEM scratch: unnormalized context
    NOTE: the scratch accumulators require the kv axis to be the innermost
    "arbitrary" grid axis; do not reorder the grid.
    """
    ki = pl.program_id(2)
    nk = pl.num_programs(2)

    # --- per-q-tile init: project Q once, reset online-softmax state ---------
    @pl.when(ki == 0)
    def _():
        qp = jnp.dot(q_ref[...].astype(jnp.bfloat16), wq_ref[...],
                     preferred_element_type=jnp.float32) + bq_ref[...]
        qp_scr[...] = qp.astype(qp_scr.dtype)
        m_scr[...] = jnp.full(m_scr.shape, -jnp.inf, jnp.float32)
        l_scr[...] = jnp.zeros(l_scr.shape, jnp.float32)
        acc_scr[...] = jnp.zeros(acc_scr.shape, jnp.float32)

    # --- online-softmax update for this kv tile, per head --------------------
    for h in range(num_heads):                      # static, small unroll
        lo = h * d_k
        qh = qp_scr[:, lo:lo + d_k]                 # (TQ, d_k) bf16 (ref slice)
        kh = k_ref[:, lo:lo + d_k]                  # (TKV, d_k) bf16
        vh = v_ref[:, lo:lo + d_k]                  # (TKV, d_k) bf16

        # scores = qh @ kh^T (scale already folded into wq/bq)
        s = jax.lax.dot_general(qh, kh, (((1,), (1,)), ((), ())),
                                preferred_element_type=jnp.float32)  # (TQ, TKV)

        m_prev = m_scr[h]                                            # (TQ, 1)
        m_new = jnp.maximum(m_prev, jnp.max(s, axis=-1, keepdims=True))
        alpha = jnp.exp(m_prev - m_new)                              # (TQ, 1)
        p = jnp.exp(s - m_new)                                       # f32 (v5e EUP)

        l_scr[h] = alpha * l_scr[h] + jnp.sum(p, axis=-1, keepdims=True)
        acc_scr[h] = alpha * acc_scr[h] + jnp.dot(
            p.astype(jnp.bfloat16), vh, preferred_element_type=jnp.float32)
        m_scr[h] = m_new

    # --- finalize: normalize, fused W_o matmul (K=D), residual + LayerNorm ---
    @pl.when(ki == nk - 1)
    def _():
        ctx_parts = []
        for h in range(num_heads):
            if approx_recip:
                ctx_h = acc_scr[h] * pl.reciprocal(l_scr[h], approx=True)
            else:
                ctx_h = acc_scr[h] / l_scr[h]
            ctx_parts.append(ctx_h.astype(jnp.bfloat16))
        ctx = jnp.concatenate(ctx_parts, axis=-1)                    # (TQ, D) bf16

        out = jnp.dot(ctx, wo_ref[...],
                      preferred_element_type=jnp.float32) + bo_ref[...]
        y = out + q_ref[...]                                         # residual (f32)
        mean = jnp.mean(y, axis=-1, keepdims=True)
        var = jnp.mean(jnp.square(y - mean), axis=-1, keepdims=True)
        y_hat = (y - mean) * jax.lax.rsqrt(var + eps)
        o_ref[...] = (y_hat * gamma_ref[...] + beta_ref[...]).astype(o_ref.dtype)


# ---------------------------------------------------------------------------
# Wrapper
# ---------------------------------------------------------------------------
def _pick_tile(total: int, target: int) -> int:
    """Largest multiple of 8 that divides `total` and is <= target (or total)."""
    if total <= target:
        return total
    t = (target // 8) * 8
    while t >= 8:
        if total % t == 0:
            return t
        t -= 8
    return total


def multi_head_attention(query, key, value, params, *, num_heads: int,
                         eps: float = 1e-5, tq=None, tkv=None, ts=None,
                         approx_reciprocal: bool = False):
    """query/key/value: [B, S, D] float32.  params: dict of f32 weights.

    Eval-mode, mask=None forward pass of the PyTorch MultiHeadAttention module.
    """
    B, S, D = query.shape
    assert D % num_heads == 0, "d_model must be divisible by num_heads"
    d_k = D // num_heads

    tq = _pick_tile(S, 256) if tq is None else tq      # MXU M-fill on v5e/v6e/v7x
    tkv = _pick_tile(S, 512) if tkv is None else tkv   # bounds VMEM independent of S
    ts = _pick_tile(S, 256) if ts is None else ts
    for t in (tq, tkv, ts):
        assert S % t == 0 and (t == S or t % 8 == 0), f"bad tile {t} for S={S}"

    scale = 1.0 / math.sqrt(d_k)
    # Pre-transpose Linear weights so kernels compute x @ W_t + b (PyTorch does
    # x @ W.T + b).  Weights go to bf16 (MXU path); biases/gamma/beta stay f32.
    # The softmax scale is folded into w_q / b_q once, on the host.
    wq_t = (params['wq'].T * scale).astype(jnp.bfloat16)
    wk_t = params['wk'].T.astype(jnp.bfloat16)
    wv_t = params['wv'].T.astype(jnp.bfloat16)
    wo_t = params['wo'].T.astype(jnp.bfloat16)
    bq = (params['bq'] * scale).reshape(1, D).astype(jnp.float32)
    bk = params['bk'].reshape(1, D).astype(jnp.float32)
    bv = params['bv'].reshape(1, D).astype(jnp.float32)
    bo = params['bo'].reshape(1, D).astype(jnp.float32)
    gamma = params['gamma'].reshape(1, D).astype(jnp.float32)
    beta = params['beta'].reshape(1, D).astype(jnp.float32)

    # K/V are only ever consumed as bf16 -> cast in the wrapper (halves HBM DMA).
    key_bf = key.astype(jnp.bfloat16)
    value_bf = value.astype(jnp.bfloat16)

    # ---------------- prologue: K/V projections ----------------
    kv_spec_in = pl.BlockSpec((None, ts, D), lambda b, si: (b, si, 0))
    w_spec2 = pl.BlockSpec((D, D), lambda b, si: (0, 0))
    vec_spec2 = pl.BlockSpec((1, D), lambda b, si: (0, 0))

    proj_cost = pl.CostEstimate(
        flops=int(4 * B * S * D * D),
        transcendentals=0,
        bytes_accessed=int(2 * 2 * B * S * D + 2 * 2 * B * S * D
                           + 2 * 2 * D * D + 2 * 4 * D))

    kp, vp = pl.pallas_call(
        kv_proj_kernel,
        out_shape=(jax.ShapeDtypeStruct((B, S, D), jnp.bfloat16),
                   jax.ShapeDtypeStruct((B, S, D), jnp.bfloat16)),
        grid_spec=pltpu.PrefetchScalarGridSpec(
            num_scalar_prefetch=0,
            grid=(B, S // ts),
            in_specs=[kv_spec_in, kv_spec_in,
                      w_spec2, vec_spec2, w_spec2, vec_spec2],
            out_specs=(kv_spec_in, kv_spec_in),
        ),
        compiler_params=pltpu.CompilerParams(
            dimension_semantics=("parallel", "parallel")),
        cost_estimate=proj_cost,
    )(key_bf, value_bf, wk_t, bk, wv_t, bv)

    # ---------------- main: flash-style attention ----------------
    q_spec = pl.BlockSpec((None, tq, D), lambda b, qi, ki: (b, qi, 0))
    kv_spec = pl.BlockSpec((None, tkv, D), lambda b, qi, ki: (b, ki, 0))
    w_spec = pl.BlockSpec((D, D), lambda b, qi, ki: (0, 0))
    vec_spec = pl.BlockSpec((1, D), lambda b, qi, ki: (0, 0))

    kernel = functools.partial(mha_attn_kernel, num_heads=num_heads, d_k=d_k,
                               eps=eps, approx_recip=approx_reciprocal)

    attn_cost = pl.CostEstimate(
        flops=int(4 * B * S * D * D + 4 * B * S * S * D),
        transcendentals=int(B * num_heads * S * S + B * S),
        bytes_accessed=int(4 * B * S * D            # q (f32) read
                           + 2 * 2 * B * S * D      # projected K/V (bf16) read
                           + 4 * B * S * D          # output (f32) write
                           + 2 * 2 * D * D          # wq + wo (bf16)
                           + 6 * 4 * D))            # biases / gamma / beta

    out = pl.pallas_call(
        kernel,
        out_shape=jax.ShapeDtypeStruct((B, S, D), query.dtype),
        grid_spec=pltpu.PrefetchScalarGridSpec(
            num_scalar_prefetch=0,
            grid=(B, S // tq, S // tkv),
            in_specs=[q_spec, kv_spec, kv_spec,
                      w_spec, vec_spec, w_spec, vec_spec, vec_spec, vec_spec],
            out_specs=q_spec,
            scratch_shapes=[
                pltpu.VMEM((tq, D), jnp.bfloat16),            # projected Q
                pltpu.VMEM((num_heads, tq, 1), jnp.float32),  # running max
                pltpu.VMEM((num_heads, tq, 1), jnp.float32),  # running sum
                pltpu.VMEM((num_heads, tq, d_k), jnp.float32),  # unnormalized ctx
            ],
        ),
        compiler_params=pltpu.CompilerParams(
            # batch / q-tile axes are megacore-shardable; the kv axis MUST stay
            # innermost + "arbitrary" (online-softmax scratch carries across it).
            dimension_semantics=("parallel", "parallel", "arbitrary"),
            vmem_limit_bytes=64 * 1024 * 1024,
        ),
        cost_estimate=attn_cost,
    )(query, kp, vp, wq_t, bq, wo_t, bo, gamma, beta)

    return out


# ---------------------------------------------------------------------------
# Reference + test
# ---------------------------------------------------------------------------
def _xavier_uniform(key, shape):
    fan_in, fan_out = shape[1], shape[0]
    bound = math.sqrt(6.0 / (fan_in + fan_out))
    return jax.random.uniform(key, shape, jnp.float32, -bound, bound)


def _reference(query, key, value, params, num_heads, eps=1e-5):
    """Pure-JAX f32 reference mirroring the PyTorch module (eval, no mask)."""
    B, S, D = query.shape
    d_k = D // num_heads

    def lin(x, w, b):
        return x @ w.T + b

    Q = lin(query, params['wq'], params['bq']).reshape(B, S, num_heads, d_k).transpose(0, 2, 1, 3)
    K = lin(key, params['wk'], params['bk']).reshape(B, S, num_heads, d_k).transpose(0, 2, 1, 3)
    V = lin(value, params['wv'], params['bv']).reshape(B, S, num_heads, d_k).transpose(0, 2, 1, 3)

    scores = jnp.einsum('bhqd,bhkd->bhqk', Q, K) / math.sqrt(d_k)
    attn = jax.nn.softmax(scores, axis=-1)
    ctx = jnp.einsum('bhqk,bhkd->bhqd', attn, V).transpose(0, 2, 1, 3).reshape(B, S, D)
    out = lin(ctx, params['wo'], params['bo'])
    y = out + query
    mean = jnp.mean(y, axis=-1, keepdims=True)
    var = jnp.mean((y - mean) ** 2, axis=-1, keepdims=True)
    return (y - mean) / jnp.sqrt(var + eps) * params['gamma'] + params['beta']


if __name__ == "__main__":
    # Small but lane-dense config: d_model = 128 keeps the last dim a full
    # (8, 128) tile; tq=tkv=8 gives a (2, 2, 2) grid exercising the prologue,
    # the online-softmax accumulation across kv tiles, and the finalize step.
    d_model = 128
    num_heads = 4
    batch = 2
    seq_len = 16

    key = jax.random.PRNGKey(0)
    k_q, k_k, k_v, k_wq, k_wk, k_wv, k_wo = jax.random.split(key, 7)

    query = jax.random.normal(k_q, (batch, seq_len, d_model), jnp.float32)
    key_t = jax.random.normal(k_k, (batch, seq_len, d_model), jnp.float32)
    value = jax.random.normal(k_v, (batch, seq_len, d_model), jnp.float32)

    params = {
        'wq': _xavier_uniform(k_wq, (d_model, d_model)),
        'bq': jnp.zeros((d_model,), jnp.float32),
        'wk': _xavier_uniform(k_wk, (d_model, d_model)),
        'bk': jnp.zeros((d_model,), jnp.float32),
        'wv': _xavier_uniform(k_wv, (d_model, d_model)),
        'bv': jnp.zeros((d_model,), jnp.float32),
        'wo': _xavier_uniform(k_wo, (d_model, d_model)),
        'bo': jnp.zeros((d_model,), jnp.float32),
        'gamma': jnp.ones((d_model,), jnp.float32),
        'beta': jnp.zeros((d_model,), jnp.float32),
    }

    out = multi_head_attention(query, key_t, value, params,
                               num_heads=num_heads, tq=8, tkv=8)
    out = jax.block_until_ready(out)

    ref = _reference(query, key_t, value, params, num_heads)
    # bf16 MXU operands loosen the tolerance vs the pure-f32 reference.
    assert jnp.allclose(out, ref, atol=7e-2, rtol=7e-2), (
        f"mismatch: max abs err {jnp.max(jnp.abs(out - ref))}")

    print("KERNEL_OK")
</pallas_src>

<mosaic_0001>
module attributes {stable_mosaic.version = 11 : i64} {
  func.func @kv_proj_kernel(%arg0: i32, %arg1: i32, %arg2: memref<1x16x128xbf16, #tpu.memory_space<vmem>>, %arg3: memref<1x16x128xbf16, #tpu.memory_space<vmem>>, %arg4: memref<128x128xbf16, #tpu.memory_space<vmem>>, %arg5: memref<1x128xf32, #tpu.memory_space<vmem>>, %arg6: memref<128x128xbf16, #tpu.memory_space<vmem>>, %arg7: memref<1x128xf32, #tpu.memory_space<vmem>>, %arg8: memref<1x16x128xbf16, #tpu.memory_space<vmem>>, %arg9: memref<1x16x128xbf16, #tpu.memory_space<vmem>>) attributes {dimension_semantics = [#tpu.dimension_semantics<parallel>, #tpu.dimension_semantics<parallel>], iteration_bounds = array<i64: 2, 1>, scalar_prefetch = 0 : i64, scratch_operands = 0 : i64, tpu.core_type = #tpu.core_type<tc>, window_params = [{transform_indices = @transform_0, window_bounds = array<i64: 1, 16, 128>}, {transform_indices = @transform_1, window_bounds = array<i64: 1, 16, 128>}, {pipeline_mode = #tpu.pipeline_mode<synchronous>, transform_indices = @transform_2, window_bounds = array<i64: 128, 128>}, {pipeline_mode = #tpu.pipeline_mode<synchronous>, transform_indices = @transform_3, window_bounds = array<i64: 1, 128>}, {pipeline_mode = #tpu.pipeline_mode<synchronous>, transform_indices = @transform_4, window_bounds = array<i64: 128, 128>}, {pipeline_mode = #tpu.pipeline_mode<synchronous>, transform_indices = @transform_5, window_bounds = array<i64: 1, 128>}, {transform_indices = @transform_6, window_bounds = array<i64: 1, 16, 128>}, {transform_indices = @transform_7, window_bounds = array<i64: 1, 16, 128>}]} {
    %c0 = arith.constant 0 : index
    %c0_0 = arith.constant 0 : index
    %c0_1 = arith.constant 0 : index
    %0 = vector.load %arg2[%c0, %c0_0, %c0_1] : memref<1x16x128xbf16, #tpu.memory_space<vmem>>, vector<1x16x128xbf16>
    %1 = vector.shape_cast %0 : vector<1x16x128xbf16> to vector<16x128xbf16>
    %c0_2 = arith.constant 0 : index
    %c0_3 = arith.constant 0 : index
    %2 = vector.load %arg4[%c0_2, %c0_3] : memref<128x128xbf16, #tpu.memory_space<vmem>>, vector<128x128xbf16>
    %cst = arith.constant dense<0.000000e+00> : vector<16x128xf32>
    %3 = tpu.matmul %1, %2, %cst {dimension_numbers = #tpu.dot_dimension_numbers<[1], [0], [0], [1], [0, 0, 1, 1], [], []>} : vector<16x128xbf16>, vector<128x128xbf16>, vector<16x128xf32> -> vector<16x128xf32>
    %c0_4 = arith.constant 0 : index
    %c0_5 = arith.constant 0 : index
    %4 = vector.load %arg5[%c0_4, %c0_5] : memref<1x128xf32, #tpu.memory_space<vmem>>, vector<1x128xf32>
    %5 = vector.broadcast %4 : vector<1x128xf32> to vector<16x128xf32>
    %6 = arith.addf %3, %5 : vector<16x128xf32>
    %7 = arith.truncf %6 : vector<16x128xf32> to vector<16x128xbf16>
    %c0_6 = arith.constant 0 : index
    %c0_7 = arith.constant 0 : index
    %c0_8 = arith.constant 0 : index
    %8 = vector.load %arg8[%c0_6, %c0_7, %c0_8] : memref<1x16x128xbf16, #tpu.memory_space<vmem>>, vector<1x16x128xbf16>
    %9 = vector.shape_cast %8 : vector<1x16x128xbf16> to vector<16x128xbf16>
    %10 = vector.shape_cast %7 : vector<16x128xbf16> to vector<1x16x128xbf16>
    tpu.vector_store %arg8[%c0_6, %c0_7, %c0_8], %10 {strides = array<i32>} : memref<1x16x128xbf16, #tpu.memory_space<vmem>>, vector<1x16x128xbf16>,
    %c0_9 = arith.constant 0 : index
    %c0_10 = arith.constant 0 : index
    %c0_11 = arith.constant 0 : index
    %11 = vector.load %arg3[%c0_9, %c0_10, %c0_11] : memref<1x16x128xbf16, #tpu.memory_space<vmem>>, vector<1x16x128xbf16>
    %12 = vector.shape_cast %11 : vector<1x16x128xbf16> to vector<16x128xbf16>
    %c0_12 = arith.constant 0 : index
    %c0_13 = arith.constant 0 : index
    %13 = vector.load %arg6[%c0_12, %c0_13] : memref<128x128xbf16, #tpu.memory_space<vmem>>, vector<128x128xbf16>
    %cst_14 = arith.constant dense<0.000000e+00> : vector<16x128xf32>
    %14 = tpu.matmul %12, %13, %cst_14 {dimension_numbers = #tpu.dot_dimension_numbers<[1], [0], [0], [1], [0, 0, 1, 1], [], []>} : vector<16x128xbf16>, vector<128x128xbf16>, vector<16x128xf32> -> vector<16x128xf32>
    %c0_15 = arith.constant 0 : index
    %c0_16 = arith.constant 0 : index
    %15 = vector.load %arg7[%c0_15, %c0_16] : memref<1x128xf32, #tpu.memory_space<vmem>>, vector<1x128xf32>
    %16 = vector.broadcast %15 : vector<1x128xf32> to vector<16x128xf32>
    %17 = arith.addf %14, %16 : vector<16x128xf32>
    %18 = arith.truncf %17 : vector<16x128xf32> to vector<16x128xbf16>
    %c0_17 = arith.constant 0 : index
    %c0_18 = arith.constant 0 : index
    %c0_19 = arith.constant 0 : index
    %19 = vector.load %arg9[%c0_17, %c0_18, %c0_19] : memref<1x16x128xbf16, #tpu.memory_space<vmem>>, vector<1x16x128xbf16>
    %20 = vector.shape_cast %19 : vector<1x16x128xbf16> to vector<16x128xbf16>
    %21 = vector.shape_cast %18 : vector<16x128xbf16> to vector<1x16x128xbf16>
    tpu.vector_store %arg9[%c0_17, %c0_18, %c0_19], %21 {strides = array<i32>} : memref<1x16x128xbf16, #tpu.memory_space<vmem>>, vector<1x16x128xbf16>,
    return
  }
  func.func @transform_0(%arg0: i32, %arg1: i32) -> (i32, i32, i32) {
    %c0_i32 = arith.constant 0 : i32
    %c0_i32_0 = arith.constant 0 : i32
    return %arg0, %arg1, %c0_i32 : i32, i32, i32
  }
  func.func @transform_1(%arg0: i32, %arg1: i32) -> (i32, i32, i32) {
    %c0_i32 = arith.constant 0 : i32
    %c0_i32_0 = arith.constant 0 : i32
    return %arg0, %arg1, %c0_i32 : i32, i32, i32
  }
  func.func @transform_2(%arg0: i32, %arg1: i32) -> (i32, i32) {
    %c0_i32 = arith.constant 0 : i32
    %c0_i32_0 = arith.constant 0 : i32
    %c0_i32_1 = arith.constant 0 : i32
    return %c0_i32, %c0_i32_0 : i32, i32
  }
  func.func @transform_3(%arg0: i32, %arg1: i32) -> (i32, i32) {
    %c0_i32 = arith.constant 0 : i32
    %c0_i32_0 = arith.constant 0 : i32
    %c0_i32_1 = arith.constant 0 : i32
    return %c0_i32, %c0_i32_0 : i32, i32
  }
  func.func @transform_4(%arg0: i32, %arg1: i32) -> (i32, i32) {
    %c0_i32 = arith.constant 0 : i32
    %c0_i32_0 = arith.constant 0 : i32
    %c0_i32_1 = arith.constant 0 : i32
    return %c0_i32, %c0_i32_0 : i32, i32
  }
  func.func @transform_5(%arg0: i32, %arg1: i32) -> (i32, i32) {
    %c0_i32 = arith.constant 0 : i32
    %c0_i32_0 = arith.constant 0 : i32
    %c0_i32_1 = arith.constant 0 : i32
    return %c0_i32, %c0_i32_0 : i32, i32
  }
  func.func @transform_6(%arg0: i32, %arg1: i32) -> (i32, i32, i32) {
    %c0_i32 = arith.constant 0 : i32
    %c0_i32_0 = arith.constant 0 : i32
    return %arg0, %arg1, %c0_i32 : i32, i32, i32
  }
  func.func @transform_7(%arg0: i32, %arg1: i32) -> (i32, i32, i32) {
    %c0_i32 = arith.constant 0 : i32
    %c0_i32_0 = arith.constant 0 : i32
    return %arg0, %arg1, %c0_i32 : i32, i32, i32
  }
}

</mosaic_0001>

<bundles_post_ra>
// kernel: tpu_custom_call.1
= control target key start
LH: loop header
LB: loop body
LE: loop exit
PB: predicated region body
PF: predicated region fallthrough
CT: control target
= control target key end

     0   :  { %s1674_s0 = inlined_call_operand.hbm [shape: bf16[2,16,128], index: 0, kind: input, shape index: {}]   ;;  %s1675_s1 = inlined_call_operand.hbm [shape: bf16[2,16,128], index: 1, kind: input, shape index: {}]   ;;  %s1676_s2 = inlined_call_operand.hbm [shape: bf16[128,128], index: 2, kind: input, shape index: {}]   ;;  %s1677_s3 = inlined_call_operand.vmem [shape: f32[1,128], index: 3, kind: input, shape index: {}]   ;;  %s1678_s4 = inlined_call_operand.hbm [shape: bf16[128,128], index: 4, kind: input, shape index: {}]   ;;  %s1679_s5 = inlined_call_operand.vmem [shape: f32[1,128], index: 5, kind: input, shape index: {}]   ;;  %s1680_s6 = inlined_call_operand.hbm [shape: bf16[2,16,128], index: 6, kind: output, shape index: {0}]   ;;  %s1681_s7 = inlined_call_operand.hbm [shape: bf16[2,16,128], index: 7, kind: output, shape index: {1}]  }
   0x1   :  { %1688 = sst [smem:[#allocation21_spill]] %s1674_s0 }
   0x2   :  { %1689 = sst [smem:[#allocation22_spill]] %s1675_s1 }
   0x3   :  { %1690 = sst [smem:[#allocation23_spill]] %s1676_s2 }
   0x4   :  { %1691 = sst [smem:[#allocation24_spill]] %s1678_s4 }
   0x5   :  { %13 = vsyncpa [#allocation3], 0 }
   0x6   :  { %15 = vsyncpa [#allocation3 + $0x1], 0 }
   0x7   :  { %16 = vsyncpa [#allocation6], 0 }
   0x8   :  { %18 = vsyncpa [#allocation6 + $0x1], 0 }
   0x9   :  { %19 = vsyncpa [#allocation9], 0 }
   0xa   :  { %20 = vsyncpa [#allocation4], 0 }
   0xb   :  { %22 = vsyncpa [#allocation4 + $0x1], 0 }
   0xc   :  { %23 = vsyncpa [#allocation12], 0 }
   0xd   :  { %25 = vsyncpa [#allocation12 + $0x1], 0  ;;  %s1400_s24 = smov 0   ;;  %s1402_s25 = smov 0  }
   0xe   :  { %s1404_s26 = smov 0   ;;  %s1406_s27 = smov 0  }
   0xf   :  { %s1408_s28 = smov 0   ;;  %s1410_s29 = smov 0  }
  0x10 LB: > { %1692 = sst [smem:[#allocation19_spill]] %s1342_s28  ;;  %s1431_s30 = sadd.s32 4294967295, %s1346_s29   ;;  %s1346_s29 = sphi %s1410_s29, %s31_s29   ;;  %s1342_s28 = sphi %s1408_s28, %s1708_s28   ;;  %s1338_s27 = sphi %s1406_s27, %s1707_s27   ;;  %s1334_s26 = sphi %s1404_s26, %s1711_s26   ;;  %s1330_s25 = sphi %s1402_s25, %s1710_s25   ;;  %s1326_s24 = sphi %s1400_s24, %s1709_s24  }
  0x11   : > { %s873_s8 = sadd.s32 4294967294, %s1346_s29   ;;  %p65_p0 = scmp.ne.s32.totalorder %s1330_s25, %s1326_s24 }
  0x12   : > { %p66_p1 = scmp.eq.s32.totalorder %s1431_s30, 0  ;;  %p203_p2 = scmp.eq.s32.totalorder %s1431_s30, 1 }
  0x13   : > { %p209_p3 = scmp.eq.s32.totalorder %s873_s8, 1  ;;  %p874_p5 = scmp.ge.s32.totalorder %s1346_s29, 1 }
  0x14   : > { %p1440_p4 = por %p66_p1, %p65_p0  ;;  %p244_p7 = scmp.lt.s32.totalorder %s1346_s29, 3 }
  0x15   : > { %p1445_p6 = por %p209_p3, %p65_p0  ;;  %s1348_s12 = smov [#allocation7]  }
  0x16   : > { %p1450_p8 = pnand %p874_p5, %p244_p7  ;;  %s256_s13 = sshll.u32 %s1348_s12, 4  ;;  %s257_s13 = int_to_ptr.vmem [resolvable:$true] %s256_s13 }
  0x17   : > { %s1349_s15 = smov [#allocation8]   ;;  %s1127_s17 = scalar_lea.vmem %s257_s13, 1024 }
  0x18   : > { %p1015_p9 = pneg %p1450_p8  ;;  %s272_s16 = sshll.u32 %s1349_s15, 4  ;;  %s273_s16 = int_to_ptr.vmem [resolvable:$true] %s272_s16 }
  0x19   : > { %p1128_p13 = scmp.ne.s32.totalorder %s257_s13, %s1127_s17  ;;  %p1135_p5 = scmp.lt.s32.totalorder %s257_s13, %s257_s13 }
  0x1a   : > { %p1459_p11 = pnand %p1015_p9, %p66_p1  ;;  %p1136_p7 = scmp.lt.s32.totalorder %s1127_s17, %s1127_s17 }
  0x1c   : > { %p1118_p12 = pneg %p1459_p11  ;;  %p1137_p10 = por %p1136_p7, %p1135_p5 }
  0x1e   : > { %p1130_p0 = pnand %p1128_p13, %p1118_p12 }
  0x20   : > { %p1131_p3 = pneg %p1130_p0 }
  0x22   : > { %p1138_p9 = pnand %p1137_p10, %p1131_p3 }
  0x24   : > { %1141 = shalt.err (!%p1138_p9)
}
  0x25   : > { %s1682_s18 = smov 64   ;;  %s1684_s19 = smov 4  }
  0x26   : > { %s1697_s2 = sld [smem:[#allocation23_spill]]  ;;  %s1153_s22 = scalar_lea.vmem %s273_s16, 1024 }
  0x27   : > { %p1154_p13 = scmp.ne.s32.totalorder %s273_s16, %s1153_s22  ;;  %p1161_p10 = scmp.lt.s32.totalorder %s273_s16, %s273_s16 }
  0x28   : > { %p1162_p3 = scmp.lt.s32.totalorder %s1153_s22, %s1153_s22 }
  0x29   : > { %p1156_p0 = pnand %p1154_p13, %p1118_p12 }
  0x2a   : > { %p1163_p7 = por %p1162_p3, %p1161_p10 }
  0x2b   : > { %p1157_p5 = pneg %p1156_p0 }
  0x2c   : > { %1018 = dma.hbm_to_vmem [thread:$0]  (!%p1459_p11), %s1697_s2, 1024, %s257_s13, [#allocation6], %s1682_s18, %s1682_s18, %s1684_s19  }
  0x2d   : > { %p1164_p9 = pnand %p1163_p7, %p1157_p5 }
  0x2f   : > { %1167 = shalt.err (!%p1164_p9)
}
  0x30   : > { %s1698_s4 = sld [smem:[#allocation24_spill]]  ;;  %s43_s12 = sadd.s32 1, %s1342_s28 }
  0x31   : > { %s52_s13 = sadd.s32 1, %s1334_s26  ;;  %p45_p12 = scmp.ge.s32.totalorder %s43_s12, 2 }
  0x32   : > { %p59_p13 = scmp.ne.s32.totalorder %s1334_s26, %s1330_s25  ;;  %p60_p0 = scmp.eq.s32.totalorder %s1346_s29, 0 }
  0x33   : > { %p1038_p5 = scmp.lt.s32.totalorder %s1346_s29, 2  ;;  %s1713_s12 = smov (%p45_p12, %s43_s12), 0 }
  0x34   : > { %1699 = sst [smem:[#allocation20_spill]] %s1713_s12  ;;  %p61_p10 = por %p60_p0, %p59_p13 }
  0x35   : > { %p1497_p3 = por %p203_p2, %p59_p13  ;;  %s47_s15 = ssub.s32 %s1342_s28, %s1713_s12 }
  0x36   : > { %1021 = dma.hbm_to_vmem [thread:$0]  (!%p1459_p11), %s1698_s4, 1024, %s273_s16, [#allocation9], %s1682_s18, %s1682_s18, %s1684_s19  }
  0x37   : > { %s289_s17 = sand.u32 1, %s1334_s26   ;;  %p50_p7 = scmp.eq.s32.totalorder %s47_s15, 0 }
  0x38   : > { %s1504_s16 = sshll.u32 %s289_s17, 3  ;;  %s923_s20 = sshll.u32 %s1342_s28, 7 }
  0x39   : > { %s1508_s21 = scalar_select %p50_p7, %s1334_s26, %s52_s13  }
  0x3a   : > { %s1701_s0 = sld [smem:[#allocation21_spill]]  ;;  %s293_s18 = scalar_lea.vmem [#allocation2], %s1504_s16 }
  0x3b   : > { %s302_s19 = sshll.u32 %s293_s18, 4  ;;  %p1516_p2 = pnand %p1038_p5, %p61_p10  ;;  %s303_s19 = int_to_ptr.vmem [resolvable:$true] %s302_s19 }
  0x3c   : > { %s1703_s1 = sld [smem:[#allocation22_spill]]  ;;  %s290_s13 = scalar_lea.sflag [#allocation3], %s289_s17 }
  0x3d   : > { %p1170_p11 = pneg %p1516_p2  ;;  %s1181_s22 = scalar_lea.vmem %s303_s19, 128 }
  0x3e   : > { %p1182_p9 = scmp.ne.s32.totalorder %s303_s19, %s1181_s22  ;;  %s1352_s18 = smov [#allocation2]  }
  0x3f   : > { %s1186_s23 = sshll.u32 %s1352_s18, 4  ;;  %s1187_s23 = int_to_ptr.vmem [resolvable:$false] %s1186_s23 }
  0x40   : > { %s301_s8 = scalar_lea.hbm %s1701_s0, %s923_s20  ;;  %p1184_p12 = pnand %p1182_p9, %p1170_p11 }
  0x41   : > { %s1188_s0 = scalar_lea.vmem %s1187_s23, 256  ;;  %p1189_p0 = scmp.lt.s32.totalorder %s303_s19, %s1187_s23 }
  0x42   : > { %s1523_s12 = scalar_lea.hbm %s1703_s1, %s923_s20  ;;  %p1185_p13 = pneg %p1184_p12 }
  0x43   : > { %p1190_p5 = scmp.lt.s32.totalorder %s1188_s0, %s1181_s22 }
  0x45   : > { %p1191_p10 = por %p1190_p5, %p1189_p0 }
  0x47   : > { %p1192_p7 = pnand %p1191_p10, %p1185_p13 }
  0x49   : > { %1195 = shalt.err (!%p1192_p7)
}
  0x4a   : > { %s1704_s4 = smov 4   ;;  %s1705_s17 = smov 64  }
  0x4b   : > { %1025 = dma.hbm_to_vmem [thread:$0]  (!%p1516_p2), %s301_s8, 128, %s303_s19, %s290_s13, %s1705_s17, %s1705_s17, %s1704_s4  }
  0x4c   : > { %s316_s20 = scalar_lea.vmem [#allocation5], %s1504_s16  ;;  %s312_s1 = sand.u32 1, %s1346_s29  }
  0x4d   : > { %s325_s15 = sshll.u32 %s316_s20, 4  ;;  %s313_s18 = scalar_lea.sflag [#allocation6], %s312_s1  ;;  %s326_s15 = int_to_ptr.vmem [resolvable:$true] %s325_s15 }
  0x4e   : > { %s1209_s28 = scalar_lea.vmem %s326_s15, 128  ;;  %s1353_s0 = smov [#allocation5]  }
  0x4f   : > { %p1210_p9 = scmp.ne.s32.totalorder %s326_s15, %s1209_s28  ;;  %s1214_s22 = sshll.u32 %s1353_s0, 4  ;;  %s1215_s22 = int_to_ptr.vmem [resolvable:$false] %s1214_s22 }
  0x50   : > { %s1216_s23 = scalar_lea.vmem %s1215_s22, 256  ;;  %p1217_p0 = scmp.lt.s32.totalorder %s326_s15, %s1215_s22 }
  0x51   : > { %p1212_p12 = pnand %p1210_p9, %p1170_p11  ;;  %p1218_p5 = scmp.lt.s32.totalorder %s1216_s23, %s1209_s28 }
  0x53   : > { %p1213_p13 = pneg %p1212_p12  ;;  %p1219_p10 = por %p1218_p5, %p1217_p0 }
  0x55   : > { %p1220_p7 = pnand %p1219_p10, %p1213_p13 }
  0x57   : > { %1223 = shalt.err (!%p1220_p7)
}
  0x58   : > { %1028 = dma.hbm_to_vmem [thread:$0]  (!%p1516_p2), %s1523_s12, 128, %s326_s15, %s313_s18, %s1705_s17, %s1705_s17, %s1704_s4  }
  0x59   : > { %337 = sbr.rel (%p1450_p8) target bundleno = 373 (0x175), region = 44  ;;  %s1549_s1 = sand.u32 (!%p1450_p8), 1, %s1330_s25  }
  0x5a   : > { %s1552_s28 = sshll.u32 (!%p1450_p8), %s1549_s1, 3  ;;  %s340_s19 = scalar_lea.sflag (!%p1450_p8), [#allocation3], %s1549_s1 }
  0x5b   : > { %s343_s16 = scalar_lea.vmem (!%p1450_p8), [#allocation2], %s1552_s28 }
  0x5e   : > { %1301 = dma.done.wait (%p1440_p4), %s340_s19, 128  }
  0x5f   : > { %1303 = vsyncadd (%p1440_p4), %s340_s19, 4294967168  ;;  %s348_s2 = sand.u32 1, %s1431_s30   ;;  %s352_s12 = scalar_lea.vmem [#allocation5], %s1552_s28 }
  0x60   : > { %s349_s11 = scalar_lea.sflag [#allocation6], %s348_s2 }
  0x61   : > { %1305 = dma.done.wait (%p1440_p4), %s349_s11, 128  }
  0x62   : > { %1307 = vsyncadd (%p1440_p4), %s349_s11, 4294967168 }
  0x63   : > { %1309 = dma.done.wait (%p66_p1), [#allocation6], 1024  }
  0x64   : > { %1311 = vsyncadd (%p66_p1), [#allocation6], 4294966272 }
  0x65   : > { %1313 = dma.done.wait (%p66_p1), [#allocation9], 1024  }
  0x66   : > { %1315 = vsyncadd (%p66_p1), [#allocation9], 4294966272  ;;  %v1354_v0 = vmov 0.0   ;;  %vm1355_vm0 = vmmov 0   ;;  %v1098_v1 = vld [vmem:[#allocation7 + $0x38] sm:$0xff]   ;;  %v1100_v3 = vld [vmem:[#allocation7 + $0x30] sm:$0xff]  }
  0x67   : > { %959 = vmatprep.subr.bf16.mxu0 %v1354_v0  ;;  %979 = vmatprep.subr.bf16.mxu1 %v1354_v0  ;;  %v1099_v2 = vld [vmem:[#allocation8 + $0x38] sm:$0xff]   ;;  %v1101_v4 = vld [vmem:[#allocation8 + $0x30] sm:$0xff]   ;;  %v1102_v5 = vld [vmem:[#allocation7 + $0x28] sm:$0xff]   ;;  %s393_s8 = scalar_lea.vmem [#allocation10], %s1552_s28  ;;  %s400_s4 = scalar_lea.vmem [#allocation11], %s1552_s28 }
  0x68   : > { %975 = vmatprep.mubr.msk.bf16.mxu0 %vm1355_vm0, %v1354_v0  ;;  %995 = vmatprep.mubr.msk.bf16.mxu1 %vm1355_vm0, %v1354_v0  ;;  %v1103_v6 = vld [vmem:[#allocation8 + $0x28] sm:$0xff]   ;;  %v1104_v7 = vld [vmem:[#allocation7 + $0x20] sm:$0xff]   ;;  %v1106_v9 = vld [vmem:[#allocation7 + $0x18] sm:$0xff]   ;;  %s687_s13 = sshll.u32 %s393_s8, 4  ;;  %s705_s17 = sshll.u32 %s400_s4, 4  ;;  %s1587_s13 = int_to_ptr.vmem [resolvable:$true] %s687_s13  ;;  %s1589_s17 = int_to_ptr.vmem [resolvable:$true] %s705_s17 }
  0x69   : > { %960 = vmatpush3.bf16.msra.mxu0 %v1098_v1  ;;  %980 = vmatpush3.bf16.msra.mxu1 %v1099_v2  ;;  %v1105_v8 = vld [vmem:[#allocation8 + $0x20] sm:$0xff]   ;;  %v1107_v10 = vld [vmem:[#allocation8 + $0x18] sm:$0xff]   ;;  %v1108_v11 = vld [vmem:[#allocation7 + $0x10] sm:$0xff]   ;;  %s929_s18 = sshll.u32 %s1338_s27, 7  ;;  %s1224_s2 = scalar_lea.vmem %s1587_s13, 128 }
  0x6a   : > { %961 = vmatprep.subr.bf16.mxu0 %v1354_v0  ;;  %981 = vmatprep.subr.bf16.mxu1 %v1354_v0  ;;  %v1109_v12 = vld [vmem:[#allocation8 + $0x10] sm:$0xff]   ;;  %v1110_v13 = vld [vmem:[#allocation7 + $0x8] sm:$0xff]   ;;  %v1112_v15 = vld [vmem:[#allocation7] sm:$0xff]   ;;  %s1594_s23 = scalar_lea.hbm %s1680_s6, %s929_s18  ;;  %s1599_s19 = scalar_lea.hbm %s1681_s7, %s929_s18 }
  0x6b   : > { %v1111_v14 = vld [vmem:[#allocation8 + $0x8] sm:$0xff]   ;;  %v1113_v16 = vld [vmem:[#allocation8] sm:$0xff]   ;;  %v1115_v18 = vld [vmem:[%s352_s12] sm:$0xff]   ;;  %p1225_p1 = scmp.ne.s32.totalorder %s1587_s13, %s1224_s2  ;;  %s1356_s11 = smov [#allocation10]  }
  0x6c   : > { %v1114_v17 = vld [vmem:[%s343_s16] sm:$0xff]   ;;  %s667_s16 = scalar_lea.sflag [#allocation4], %s1549_s1  ;;  %s1228_s12 = sshll.u32 %s1356_s11, 4  ;;  %s1229_s12 = int_to_ptr.vmem [resolvable:$false] %s1228_s12 }
  0x6d   : > { %962 = vmatpush3.bf16.msra.mxu0 %v1100_v3  ;;  %982 = vmatpush3.bf16.msra.mxu1 %v1101_v4  ;;  %v891_v21 = vld [vmem:[%s1677_s3] ss:$0 sm:$0xff]  ;;  %p1226_p4 = pnand %p1225_p1, %p1497_p3  ;;  %s1230_s30 = scalar_lea.vmem %s1229_s12, 256 }
  0x6e   : > { %963 = vmatprep.subr.bf16.mxu0 %v1354_v0  ;;  %983 = vmatprep.subr.bf16.mxu1 %v1354_v0  ;;  %v903_v23 = vld [vmem:[%s1679_s5] ss:$0 sm:$0xff]  ;;  %p1231_p2 = scmp.lt.s32.totalorder %s1587_s13, %s1229_s12  ;;  %p1232_p11 = scmp.lt.s32.totalorder %s1230_s30, %s1224_s2 }
  0x6f   : > { %p1227_p8 = pneg %p1226_p4 }
  0x70   : > { %p1233_p9 = por %p1232_p11, %p1231_p2 }
  0x71   : > { %964 = vmatpush3.bf16.msra.mxu0 %v1102_v5  ;;  %984 = vmatpush3.bf16.msra.mxu1 %v1103_v6 }
  0x72   : > { %965 = vmatprep.subr.bf16.mxu0 %v1354_v0  ;;  %985 = vmatprep.subr.bf16.mxu1 %v1354_v0  ;;  %p1234_p12 = pnand %p1233_p9, %p1227_p8 }
  0x75   : > { %966 = vmatpush3.bf16.msra.mxu0 %v1104_v7  ;;  %986 = vmatpush3.bf16.msra.mxu1 %v1105_v8 }
  0x76   : > { %967 = vmatprep.subr.bf16.mxu0 %v1354_v0  ;;  %987 = vmatprep.subr.bf16.mxu1 %v1354_v0 }
  0x79   : > { %968 = vmatpush3.bf16.msra.mxu0 %v1106_v9  ;;  %988 = vmatpush3.bf16.msra.mxu1 %v1107_v10 }
  0x7a   : > { %969 = vmatprep.subr.bf16.mxu0 %v1354_v0  ;;  %989 = vmatprep.subr.bf16.mxu1 %v1354_v0 }
  0x7d   : > { %970 = vmatpush3.bf16.msra.mxu0 %v1108_v11  ;;  %990 = vmatpush3.bf16.msra.mxu1 %v1109_v12 }
  0x7e   : > { %971 = vmatprep.subr.bf16.mxu0 %v1354_v0  ;;  %991 = vmatprep.subr.bf16.mxu1 %v1354_v0 }
  0x81   : > { %972 = vmatpush3.bf16.msra.mxu0 %v1110_v13  ;;  %992 = vmatpush3.bf16.msra.mxu1 %v1111_v14 }
  0x82   : > { %973 = vmatprep.subr.bf16.mxu0 %v1354_v0  ;;  %993 = vmatprep.subr.bf16.mxu1 %v1354_v0 }
  0x85   : > { %974 = vmatpush3.bf16.msra.mxu0 %v1112_v15  ;;  %994 = vmatpush3.bf16.msra.mxu1 %v1113_v16 }
  0x88   : > { %976 = vmatmul.mubr.bf16.vlgmr.msra.gmra.mxu0 %v1114_v17  ;;  %996 = vmatmul.mubr.bf16.vlgmr.msra.gmra.mxu1 %v1115_v18 }
 0x148   : > { %v519_v19 = vpop.f32.mrf.mxu0  ;;  %v649_v20 = vpop.f32.mrf.mxu1 }
 0x149   : > { %v520_v26 = vadd.f32 %v891_v21, %v519_v19  ;;  %v650_v29 = vadd.f32 %v903_v23, %v649_v20 }
 0x14a   : > { %v977_v22 = vpop.f32.mrf.mxu0  ;;  %v997_v24 = vpop.f32.mrf.mxu1 }
 0x14c   : > { %v522_v25 = vpop.f32.mrf.mxu0  ;;  %v652_v28 = vpop.f32.mrf.mxu1 }
 0x14d   : > { %v523_v27 = vadd.f32 %v891_v21, %v522_v25  ;;  %v653_v30 = vadd.f32 %v903_v23, %v652_v28 }
 0x14e   : > { %v978_v31 = vpop.f32.mrf.mxu0  ;;  %v998_v33 = vpop.f32.mrf.mxu1 }
 0x14f   : > { %v934_v32 = vpack.c.bf16 %v523_v27, %v520_v26  ;;  %v939_v34 = vpack.c.bf16 %v653_v30, %v650_v29 }
 0x151   : > { %935 = vst [vmem:[%s393_s8] sm:$0xff] %v934_v32   ;;  %940 = vst [vmem:[%s400_s4] sm:$0xff] %v939_v34  }
 0x152   : > { %1237 = shalt.err (!%p1234_p12)
}
 0x153   : > { %s1238_s9 = scalar_lea.hbm %s1594_s23, 128  ;;  %s1242_s20 = scalar_lea.hbm %s1680_s6, 256 }
 0x154   : > { %p1239_p13 = scmp.ne.s32.totalorder %s1594_s23, %s1238_s9  ;;  %p1243_p10 = scmp.lt.s32.totalorder %s1594_s23, %s1680_s6 }
 0x155   : > { %p1244_p7 = scmp.lt.s32.totalorder %s1242_s20, %s1238_s9 }
 0x156   : > { %p1240_p0 = pnand %p1239_p13, %p1497_p3 }
 0x157   : > { %p1245_p1 = por %p1244_p7, %p1243_p10 }
 0x158   : > { %p1241_p5 = pneg %p1240_p0 }
 0x15a   : > { %p1246_p4 = pnand %p1245_p1, %p1241_p5 }
 0x15c   : > { %1249 = shalt.err (!%p1246_p4)
}
 0x15d   : > { %s1357_s0 = smov 64   ;;  %s1358_s22 = smov 4  }
 0x15e   : > { %1011 = dma.vmem_to_hbm [thread:$0]  (%p1497_p3), %s1587_s13, 128, %s1594_s23, %s667_s16, %s1357_s0, %s1357_s0, %s1358_s22  }
 0x15f   : > { %s672_s27 = scalar_lea.sflag [#allocation12], %s1549_s1  ;;  %s1250_s28 = scalar_lea.vmem %s1589_s17, 128 }
 0x160   : > { %p1251_p8 = scmp.ne.s32.totalorder %s1589_s17, %s1250_s28  ;;  %s1359_s2 = smov [#allocation11]  }
 0x161   : > { %s1254_s11 = sshll.u32 %s1359_s2, 4  ;;  %s1255_s11 = int_to_ptr.vmem [resolvable:$false] %s1254_s11 }
 0x162   : > { %p1252_p2 = pnand %p1251_p8, %p1497_p3  ;;  %s1256_s12 = scalar_lea.vmem %s1255_s11, 256 }
 0x163   : > { %p1257_p9 = scmp.lt.s32.totalorder %s1589_s17, %s1255_s11  ;;  %p1258_p12 = scmp.lt.s32.totalorder %s1256_s12, %s1250_s28 }
 0x164   : > { %p1253_p11 = pneg %p1252_p2 }
 0x165   : > { %p1259_p13 = por %p1258_p12, %p1257_p9 }
 0x167   : > { %p1260_p0 = pnand %p1259_p13, %p1253_p11 }
 0x169   : > { %1263 = shalt.err (!%p1260_p0)
}
 0x16a   : > { %s1264_s13 = scalar_lea.hbm %s1599_s19, 128  ;;  %s1268_s16 = scalar_lea.hbm %s1681_s7, 256 }
 0x16b   : > { %p1265_p5 = scmp.ne.s32.totalorder %s1599_s19, %s1264_s13  ;;  %p1269_p1 = scmp.lt.s32.totalorder %s1599_s19, %s1681_s7 }
 0x16c   : > { %p1270_p4 = scmp.lt.s32.totalorder %s1268_s16, %s1264_s13 }
 0x16d   : > { %p1266_p10 = pnand %p1265_p5, %p1497_p3 }
 0x16e   : > { %p1271_p8 = por %p1270_p4, %p1269_p1 }
 0x16f   : > { %p1267_p7 = pneg %p1266_p10 }
 0x171   : > { %p1272_p2 = pnand %p1271_p8, %p1267_p7 }
 0x173   : > { %1275 = shalt.err (!%p1272_p2)
}
 0x174   : > { %1012 = dma.vmem_to_hbm [thread:$0]  (%p1497_p3), %s1589_s17, 128, %s1599_s19, %s672_s27, %s1357_s0, %s1357_s0, %s1358_s22  }
 0x175 PF: > { %s720_s8 = sand.u32 1, %s1326_s24   ;;  %p1706_p11 = scmp.ge.s32.totalorder %s1346_s29, 2 }
 0x176   : > { %s721_s4 = scalar_lea.sflag [#allocation4], %s720_s8 }
 0x177   : > { %p1030_p9 = pnand %p1706_p11, %p1445_p6 }
 0x179   : > { %p1031_p12 = pneg %p1030_p9 }
 0x17b   : > { %1317 = dma.done.wait (%p1031_p12), %s721_s4, 128  }
 0x17c   : > { %1319 = vsyncadd (%p1031_p12), %s721_s4, 4294967168  ;;  %s730_s20 = scalar_lea.sflag [#allocation12], %s720_s8 }
 0x17d   : > { %1321 = dma.done.wait (%p1031_p12), %s730_s20, 128  }
 0x17e   : > { %1323 = vsyncadd (%p1031_p12), %s730_s20, 4294967168  ;;  %s31_s29 = sadd.s32 1, %s1346_s29   ;;  %s1707_s27 = sld [smem:[#allocation19_spill]] }
 0x17f   : > { %p28_p13 = scmp.ge.s32.totalorder %s31_s29, 4   ;;  %s1708_s28 = sld [smem:[#allocation20_spill]] }
 0x180   : > { %s1709_s24 = smov %s1330_s25  ;;  %s1710_s25 = smov %s1334_s26 }
 0x181   : > { %s1711_s26 = smov %s1508_s21  ;;  %30 = sbr.rel (!%p28_p13) target bundleno = 16 (0x10), region = 127 }
 0x186   :  { %735 = vsyncpa [#allocation3], 1 }
 0x187   :  { %737 = vsyncpa [#allocation3 + $0x1], 1 }
 0x188   :  { %738 = vsyncpa [#allocation6], 1 }
 0x189   :  { %740 = vsyncpa [#allocation6 + $0x1], 1 }
 0x18a   :  { %741 = vsyncpa [#allocation9], 1 }
 0x18b   :  { %742 = vsyncpa [#allocation4], 1 }
 0x18c   :  { %744 = vsyncpa [#allocation4 + $0x1], 1 }
 0x18d   :  { %745 = vsyncpa [#allocation12], 1 }
 0x18e   :  { %747 = vsyncpa [#allocation12 + $0x1], 1 }

</bundles_post_ra>
